<compile_context>
chip_gen: v7x
topology: tpu7x:2x2x1
jax: 0.10.0
libtpu: 0.0.40
codegen_flags: <defaults>
</compile_context>

<pallas_src>
import numpy as np
import jax
import jax.numpy as jnp
from jax import lax
from jax.experimental import pallas as pl
from jax.experimental.pallas import tpu as pltpu


# ----------------------------------------------------------------------------
# Kernel: conv1(+layout change) -> ReLU -> conv2 fused with MaxPool1d(2)
# ----------------------------------------------------------------------------
def _fused_kernel(x_ref, t1t_ref, t2et_ref, t2ot_ref, bias_ref, out_ref):
    # x_ref:    (TB, L)   native layout (batch rows on sublanes)
    # t1t_ref:  (O1, L)   transposed Toeplitz for conv1
    # t2et_ref: (OP, O1)  conv2 Toeplitz, even pooling branch (taps 4p+0..2)
    # t2ot_ref: (OP, O1)  conv2 Toeplitz, odd  pooling branch (taps 4p+2..4)
    # bias_ref: (2,)      [conv1 bias, conv2 bias] in SMEM
    # out_ref:  (OP, TB)  batch on lanes -> unmasked, lane-dense stores
    b1 = bias_ref[0]
    b2 = bias_ref[1]

    # conv1 (K=3, stride 2) fused with the batch->lanes layout change:
    #   cT[j, n] = sum_l t1t[j, l] * x[n, l]
    cT = lax.dot_general(
        t1t_ref[...], x_ref[...],
        dimension_numbers=(((1,), (1,)), ((), ())),
        precision=lax.Precision.HIGHEST,
        preferred_element_type=jnp.float32)                     # (O1, TB)

    # TODO(synk): the torch module also computes a = BatchNorm1d(c); `a` never
    # reaches the returned value, so only its training-mode running-stat side
    # effect is dropped here.
    dT = jnp.maximum(cT + b1, 0.0)                               # ReLU

    # conv2 (K=3, stride 2) fused with MaxPool1d(2):
    #   e[2p]   = d[4p]*w0   + d[4p+1]*w1 + d[4p+2]*w2 + b2   (even branch)
    #   e[2p+1] = d[4p+2]*w0 + d[4p+3]*w1 + d[4p+4]*w2 + b2   (odd branch)
    #   out[p]  = max(e[2p], e[2p+1])
    evenT = jnp.dot(t2et_ref[...], dT,
                    precision=lax.Precision.HIGHEST,
                    preferred_element_type=jnp.float32)          # (OP, TB)
    oddT = jnp.dot(t2ot_ref[...], dT,
                   precision=lax.Precision.HIGHEST,
                   preferred_element_type=jnp.float32)           # (OP, TB)
    out_ref[...] = jnp.maximum(evenT, oddT) + b2


# ----------------------------------------------------------------------------
# Wrapper
# ----------------------------------------------------------------------------
def _round_up(v, m):
    return (v + m - 1) // m * m


def model_forward(x, conv1_w, conv1_b, conv2_w, conv2_b,
                  *, vmem_budget_bytes=18 << 20):
    """x: (B, 1, L) float32; conv*_w: (3,); conv*_b: scalar. Returns (B, 1, OP)."""
    B, C, L = x.shape
    assert C == 1
    O1 = (L - 3) // 2 + 1
    assert O1 >= 5, "input length too small (need O2 >= 2 for MaxPool1d(2))"
    O2 = (O1 - 3) // 2 + 1
    OP = O2 // 2
    assert OP >= 1

    # Free, contiguous reshape — no HBM pass (this replaces the old transpose).
    x2 = x.reshape(B, L).astype(jnp.float32)

    # Tiny Toeplitz matrices built host-side.
    w1 = np.asarray(conv1_w, dtype=np.float32).reshape(3)
    w2 = np.asarray(conv2_w, dtype=np.float32).reshape(3)
    t1t = np.zeros((O1, L), dtype=np.float32)
    for j in range(O1):
        t1t[j, 2 * j:2 * j + 3] = w1
    t2et = np.zeros((OP, O1), dtype=np.float32)
    t2ot = np.zeros((OP, O1), dtype=np.float32)
    for p in range(OP):
        t2et[p, 4 * p:4 * p + 3] = w2
        t2ot[p, 4 * p + 2:4 * p + 5] = w2
    t1t = jnp.asarray(t1t)
    t2et = jnp.asarray(t2et)
    t2ot = jnp.asarray(t2ot)
    bias = jnp.stack([jnp.asarray(conv1_b, jnp.float32).reshape(()),
                      jnp.asarray(conv2_b, jnp.float32).reshape(())])

    # ---- batch tiling -------------------------------------------------------
    LANE = 128
    # Double-buffered VMEM bytes per batch column (f32):
    #   x blocks (lane-padded) + (cT/dT) intermediates + even/odd/out blocks.
    per_sample = 4 * (2 * _round_up(L, LANE)
                      + 2 * _round_up(O1, 8)
                      + 4 * _round_up(OP, 8))
    tb_cap = max(LANE, min(1 << 16,
                           (vmem_budget_bytes // per_sample) // LANE * LANE))

    B128 = _round_up(B, LANE)           # lane-dense batch (feedback: pad to 128)
    if B128 <= 2 * LANE:
        TB = B128                       # genuinely tiny batch: single block
    else:
        # >= 2 tiles so v7x's two TensorCores both get work ("parallel" grid),
        # capped by the VMEM budget (larger tiles amortize per-step overhead).
        TB = min(tb_cap, _round_up(pl.cdiv(B128, 2), LANE))
    grid_b = pl.cdiv(B128, TB)
    B_pad = grid_b * TB

    if B_pad != B:
        # TODO(synk): for very large, oddly-sized B this zero-pad is an extra
        # HBM pass; a masked last tile would avoid it.
        x2 = jnp.pad(x2, ((0, B_pad - B), (0, 0)))

    out_t = pl.pallas_call(
        _fused_kernel,
        out_shape=jax.ShapeDtypeStruct((OP, B_pad), jnp.float32),
        grid=(grid_b,),
        in_specs=[
            pl.BlockSpec((TB, L), lambda i: (i, 0)),              # x (native)
            pl.BlockSpec((O1, L), lambda i: (0, 0)),              # t1t
            pl.BlockSpec((OP, O1), lambda i: (0, 0)),             # t2et
            pl.BlockSpec((OP, O1), lambda i: (0, 0)),             # t2ot
            pl.BlockSpec(memory_space=pltpu.MemorySpace.SMEM),    # biases
        ],
        out_specs=pl.BlockSpec((OP, TB), lambda i: (0, i)),
        compiler_params=pltpu.CompilerParams(
            dimension_semantics=("parallel",),
            vmem_limit_bytes=32 * 1024 * 1024),
    )(x2, t1t, t2et, t2ot, bias)

    out_small = out_t[:, :B]                                      # (OP, B)
    if OP == 1:
        # (1, B) -> (B, 1, 1) is a free contiguous reshape: no transpose pass.
        return out_small.reshape(B, 1, 1)
    # TODO(synk): for OP > 1 this small (OP, B) -> (B, OP) transpose is one
    # extra XLA pass over the (tiny) output; fuse into the consumer if needed.
    return jnp.transpose(out_small).reshape(B, 1, OP)


# ----------------------------------------------------------------------------
# Pure numpy reference (matches the PyTorch forward semantics)
# ----------------------------------------------------------------------------
def _reference(x, w1, b1, w2, b2):
    x = np.asarray(x, dtype=np.float32)
    B = x.shape[0]

    def conv(v, w, b):  # v: (B, Lin) -> (B, Lout), K=3, stride 2
        Lin = v.shape[1]
        Lout = (Lin - 3) // 2 + 1
        out = np.zeros((B, Lout), dtype=np.float32)
        for j in range(Lout):
            out[:, j] = (v[:, 2 * j] * w[0] + v[:, 2 * j + 1] * w[1]
                         + v[:, 2 * j + 2] * w[2] + b)
        return out

    c = conv(x[:, 0, :], np.asarray(w1, np.float32), np.float32(b1))
    d = np.maximum(c, 0.0)
    e = conv(d, np.asarray(w2, np.float32), np.float32(b2))
    n = e.shape[1] // 2
    pooled = np.maximum(e[:, 0:2 * n:2], e[:, 1:2 * n:2])
    return pooled.reshape(B, 1, n)


if __name__ == "__main__":
    key = jax.random.PRNGKey(0)
    # Small shapes consistent with the module's forward:
    # (B, 1, L=16): conv1 -> 7, relu, conv2 -> 3, maxpool(2) -> 1.
    # B=500 exercises lane padding (-> 512), a 2-tile grid and output slicing.
    B, L = 500, 16
    x = jax.random.normal(key, (B, 1, L), dtype=jnp.float32)

    # torch.manual_seed(3) is called before *both* Conv1d constructions, so the
    # two convs share identical (deterministic) weights/bias.
    conv_w = jnp.array([0.3, -0.5, 0.2], dtype=jnp.float32)
    conv_b = 0.1

    out = model_forward(x, conv_w, conv_b, conv_w, conv_b)
    out = jax.block_until_ready(out)
    assert out.shape == (B, 1, 1)

    ref = _reference(np.asarray(x), np.asarray(conv_w), conv_b,
                     np.asarray(conv_w), conv_b)
    np.testing.assert_allclose(np.asarray(out), ref, rtol=1e-5, atol=1e-5)

    print("KERNEL_OK")
</pallas_src>

<mosaic_0001>
module attributes {stable_mosaic.version = 11 : i64} {
  func.func @_fused_kernel(%arg0: i32, %arg1: memref<256x16xf32, #tpu.memory_space<vmem>>, %arg2: memref<7x16xf32, #tpu.memory_space<vmem>>, %arg3: memref<1x7xf32, #tpu.memory_space<vmem>>, %arg4: memref<1x7xf32, #tpu.memory_space<vmem>>, %arg5: memref<2xf32, #tpu.memory_space<smem>>, %arg6: memref<1x256xf32, #tpu.memory_space<vmem>>) attributes {dimension_semantics = [#tpu.dimension_semantics<parallel>], iteration_bounds = array<i64: 2>, scalar_prefetch = 0 : i64, scratch_operands = 0 : i64, tpu.core_type = #tpu.core_type<tc>, window_params = [{transform_indices = @transform_0, window_bounds = array<i64: 256, 16>}, {pipeline_mode = #tpu.pipeline_mode<synchronous>, transform_indices = @transform_1, window_bounds = array<i64: 7, 16>}, {pipeline_mode = #tpu.pipeline_mode<synchronous>, transform_indices = @transform_2, window_bounds = array<i64: 1, 7>}, {pipeline_mode = #tpu.pipeline_mode<synchronous>, transform_indices = @transform_3, window_bounds = array<i64: 1, 7>}, {transform_indices = @transform_4, window_bounds = array<i64: 2>}, {transform_indices = @transform_5, window_bounds = array<i64: 1, 256>}]} {
    %c0 = arith.constant 0 : index
    %0 = memref.load %arg5[%c0] : memref<2xf32, #tpu.memory_space<smem>>
    %c1 = arith.constant 1 : index
    %1 = memref.load %arg5[%c1] : memref<2xf32, #tpu.memory_space<smem>>
    %c0_0 = arith.constant 0 : index
    %c0_1 = arith.constant 0 : index
    %2 = vector.load %arg2[%c0_0, %c0_1] : memref<7x16xf32, #tpu.memory_space<vmem>>, vector<7x16xf32>
    %c0_2 = arith.constant 0 : index
    %c0_3 = arith.constant 0 : index
    %3 = vector.load %arg1[%c0_2, %c0_3] : memref<256x16xf32, #tpu.memory_space<vmem>>, vector<256x16xf32>
    %cst = arith.constant dense<0.000000e+00> : vector<7x256xf32>
    %4 = tpu.matmul %2, %3, %cst {dimension_numbers = #tpu.dot_dimension_numbers<[1], [1], [0], [0], [0, 0, 1, 0], [], []>, precision = #tpu.contract_precision<fp32>} : vector<7x16xf32>, vector<256x16xf32>, vector<7x256xf32> -> vector<7x256xf32>
    %5 = vector.broadcast %0 : f32 to vector<7x256xf32>
    %6 = arith.addf %4, %5 : vector<7x256xf32>
    %cst_4 = arith.constant 0.000000e+00 : f32
    %7 = vector.broadcast %cst_4 : f32 to vector<7x256xf32>
    %8 = arith.maximumf %6, %7 : vector<7x256xf32>
    %c0_5 = arith.constant 0 : index
    %c0_6 = arith.constant 0 : index
    %9 = vector.load %arg3[%c0_5, %c0_6] : memref<1x7xf32, #tpu.memory_space<vmem>>, vector<1x7xf32>
    %cst_7 = arith.constant dense<0.000000e+00> : vector<1x256xf32>
    %10 = tpu.matmul %9, %8, %cst_7 {dimension_numbers = #tpu.dot_dimension_numbers<[1], [0], [0], [1], [0, 0, 1, 1], [], []>, precision = #tpu.contract_precision<fp32>} : vector<1x7xf32>, vector<7x256xf32>, vector<1x256xf32> -> vector<1x256xf32>
    %c0_8 = arith.constant 0 : index
    %c0_9 = arith.constant 0 : index
    %11 = vector.load %arg4[%c0_8, %c0_9] : memref<1x7xf32, #tpu.memory_space<vmem>>, vector<1x7xf32>
    %cst_10 = arith.constant dense<0.000000e+00> : vector<1x256xf32>
    %12 = tpu.matmul %11, %8, %cst_10 {dimension_numbers = #tpu.dot_dimension_numbers<[1], [0], [0], [1], [0, 0, 1, 1], [], []>, precision = #tpu.contract_precision<fp32>} : vector<1x7xf32>, vector<7x256xf32>, vector<1x256xf32> -> vector<1x256xf32>
    %13 = arith.maximumf %10, %12 : vector<1x256xf32>
    %14 = vector.broadcast %1 : f32 to vector<1x256xf32>
    %15 = arith.addf %13, %14 : vector<1x256xf32>
    %c0_11 = arith.constant 0 : index
    %c0_12 = arith.constant 0 : index
    %16 = vector.load %arg6[%c0_11, %c0_12] : memref<1x256xf32, #tpu.memory_space<vmem>>, vector<1x256xf32>
    tpu.vector_store %arg6[%c0_11, %c0_12], %15 {strides = array<i32>} : memref<1x256xf32, #tpu.memory_space<vmem>>, vector<1x256xf32>,
    return
  }
  func.func @transform_0(%arg0: i32) -> (i32, i32) {
    %c0_i32 = arith.constant 0 : i32
    %c0_i32_0 = arith.constant 0 : i32
    return %arg0, %c0_i32 : i32, i32
  }
  func.func @transform_1(%arg0: i32) -> (i32, i32) {
    %c0_i32 = arith.constant 0 : i32
    %c0_i32_0 = arith.constant 0 : i32
    %c0_i32_1 = arith.constant 0 : i32
    return %c0_i32, %c0_i32_0 : i32, i32
  }
  func.func @transform_2(%arg0: i32) -> (i32, i32) {
    %c0_i32 = arith.constant 0 : i32
    %c0_i32_0 = arith.constant 0 : i32
    %c0_i32_1 = arith.constant 0 : i32
    return %c0_i32, %c0_i32_0 : i32, i32
  }
  func.func @transform_3(%arg0: i32) -> (i32, i32) {
    %c0_i32 = arith.constant 0 : i32
    %c0_i32_0 = arith.constant 0 : i32
    %c0_i32_1 = arith.constant 0 : i32
    return %c0_i32, %c0_i32_0 : i32, i32
  }
  func.func @transform_4(%arg0: i32) -> i32 {
    %c0_i32 = arith.constant 0 : i32
    %c0_i32_0 = arith.constant 0 : i32
    return %c0_i32 : i32
  }
  func.func @transform_5(%arg0: i32) -> (i32, i32) {
    %c0_i32 = arith.constant 0 : i32
    %c0_i32_0 = arith.constant 0 : i32
    return %c0_i32, %arg0 : i32, i32
  }
}

</mosaic_0001>

<bundles_post_ra>
// kernel: tpu_custom_call.1
= control target key start
LH: loop header
LB: loop body
LE: loop exit
PB: predicated region body
PF: predicated region fallthrough
CT: control target
= control target key end

     0   :  { %10 = vsyncpa [#allocation4], 0  ;;  %s3636_s0 = inlined_call_operand.vmem [shape: f32[512,16], index: 0, kind: input, shape index: {}]   ;;  %s3637_s1 = inlined_call_operand.vmem [shape: f32[7,16], index: 1, kind: input, shape index: {}]   ;;  %s3638_s2 = inlined_call_operand.vmem [shape: f32[1,7], index: 2, kind: input, shape index: {}]   ;;  %s3639_s3 = inlined_call_operand.vmem [shape: f32[1,7], index: 3, kind: input, shape index: {}]   ;;  %s3640_s4 = inlined_call_operand.vmem [shape: f32[2], index: 4, kind: input, shape index: {}]   ;;  %s3641_s5 = inlined_call_operand.hbm [shape: f32[1,512], index: 5, kind: output, shape index: {}]  }
   0x1   :  { %11 = vsyncpa [#allocation3], 0 }
   0x2   :  { %13 = vsyncpa [#allocation3 + $0x1], 0  ;;  %s2906_s18 = smov 0   ;;  %s2908_s19 = smov 0  }
   0x3   :  { %s2910_s20 = smov 0   ;;  %s2912_s21 = smov 0  }
   0x4 LB: > { %s2927_s22 = sadd.s32 4294967295, %s2870_s21   ;;  %s2293_s23 = sadd.s32 4294967294, %s2870_s21   ;;  %s2870_s21 = sphi %s2912_s21, %s3727_s21   ;;  %s2866_s20 = sphi %s2910_s20, %s3726_s20   ;;  %s2862_s19 = sphi %s2908_s19, %s3725_s19   ;;  %s2858_s18 = sphi %s2906_s18, %s3724_s18  }
   0x5   : > { %s2931_s24 = sadd.s32 1, %s2870_s21   ;;  %s136_s25 = sadd.s32 1, %s2866_s20 }
   0x6   : > { %s133_s26 = ssub.s32 %s2870_s21, %s2931_s24  ;;  %p146_p0 = scmp.ne.s32.totalorder %s2866_s20, %s2862_s19 }
   0x7   : > { %p134_p1 = scmp.eq.s32.totalorder %s133_s26, 0  ;;  %p147_p2 = scmp.eq.s32.totalorder %s2927_s22, 1 }
   0x8   : > { %p152_p3 = scmp.ne.s32.totalorder %s2862_s19, %s2858_s18  ;;  %p153_p4 = scmp.eq.s32.totalorder %s2293_s23, 1 }
   0x9   : > { %s2942_s27 = scalar_select %p134_p1, %s2866_s20, %s136_s25  }
   0xa   : > { %p2944_p5 = por %p147_p2, %p146_p0  ;;  %p2948_p6 = por %p153_p4, %p152_p3 }
   0xb   : > { %p2294_p7 = scmp.ge.s32.totalorder %s2870_s21, 1  ;;  %p160_p8 = scmp.lt.s32.totalorder %s2870_s21, 3 }
   0xc   : > { %p2751_p9 = scmp.eq.s32.totalorder %s2927_s22, 0  ;;  %s182_s8 = sshll.u32 %s3640_s4, 4  ;;  %s183_s8 = int_to_ptr.vmem [resolvable:$true] %s182_s8 }
   0xd   : > { %p2955_p10 = pnand %p2294_p7, %p160_p8  ;;  %s2789_s9 = scalar_lea.vmem %s183_s8, 16 }
   0xe   : > { %p2790_p13 = scmp.ne.s32.totalorder %s183_s8, %s2789_s9  ;;  %p2797_p3 = scmp.lt.s32.totalorder %s183_s8, %s183_s8 }
   0xf   : > { %p2743_p11 = pneg %p2955_p10  ;;  %p2798_p4 = scmp.lt.s32.totalorder %s2789_s9, %s2789_s9 }
  0x11   : > { %p2744_p12 = pnand %p2751_p9, %p2743_p11  ;;  %p2799_p7 = por %p2798_p4, %p2797_p3 }
  0x13   : > { %p2791_p0 = pneg %p2744_p12 }
  0x15   : > { %p2792_p1 = pnand %p2791_p0, %p2790_p13 }
  0x17   : > { %p2793_p2 = pneg %p2792_p1 }
  0x19   : > { %p2800_p8 = pnand %p2799_p7, %p2793_p2 }
  0x1b   : > { %2803 = shalt.err (!%p2800_p8)
}
  0x1c   : > { %s2872_s10 = smov [#allocation2]   ;;  %204 = sbr.rel (%p2955_p10) target bundleno = 745 (0x2e9), region = 40 }
  0x1d   : > { %2746 = dma.vmem_to_smem (!%p2744_p12), %s183_s8, 16, %s2872_s10, [#allocation4]  }
  0x23   : > { %2849 = dma.done.wait (%p2751_p9), [#allocation4], 16  }
  0x24   : > { %2851 = vsyncadd (%p2751_p9), [#allocation4], 4294967280 }
  0x25   : > { %210 = sfence }
  0x26   : > { %s2973_s11 = sshll.u32 %s2927_s22, 5  ;;  %vm276_vm0 = vcmask 130048   ;;  %v242_v0 = vld [vmem:[%s3637_s1] sm:$0x7f]  ;;  %vm1234_vm1 = vcmask 56320   ;;  %s240_s6 = sld [smem:[#allocation2]] }
  0x27   : > { %p234_p11 = scmp.lt.s32.totalorder %s2973_s11, 63  ;;  %v278_v1 = vsel %vm276_vm0, %v242_v0, 0  ;;  %vm1238_vm2 = vcmask 1046528   ;;  %s2302_s7 = sld [smem:[#allocation2 + $0x1]] }
  0x28   : > { %v2980_v2 = vand.u32 4294901760, %v278_v1  ;;  %s230_s8 = sand.u32 1, %s2862_s19  }
  0x29   : > { %s235_s14 = scalar_select %p234_p11, %s2973_s11, 63 }
  0x2a   : > { %v2984_v3 = vsub.f32 %v278_v1, %v2980_v2  ;;  %s2299_s9 = sshll.u32 %s230_s8, 1  ;;  %s2208_s16 = scalar_lea.sflag [#allocation3], %s230_s8 }
  0x2b   : > { %s2301_s15 = sshll.u32 %s235_s14, 3  ;;  %s232_s10 = scalar_lea.vmem [#allocation5], %s2299_s9 }
  0x2c   : > { %3672 = vst [vmem:[#allocation8_spill] sm:$0xff] %v2984_v3  ;;  %s2989_s22 = scalar_lea.vmem %s3636_s0, %s2301_s15  ;;  %v2992_v4 = vand.u32 4294901760, %v2984_v3  ;;  %s2222_s12 = sshll.u32 %s232_s10, 4  ;;  %s3596_s12 = int_to_ptr.vmem [resolvable:$true] %s2222_s12 }
  0x2d   : > { %v259_v5 = vld [vmem:[%s2989_s22 + $0x80] sm:$0xff]  ;;  %v260_v6 = vld [vmem:[%s2989_s22 + $0x88] sm:$0xff]  ;;  %v261_v12 = vld [vmem:[%s2989_s22 + $0x90] sm:$0xff]  ;;  %s3594_s15 = scalar_lea.hbm %s3641_s5, %s2973_s11  ;;  %s2804_s17 = scalar_lea.vmem %s3596_s12, 32 }
  0x2e   : > { %v243_v7 = vld [vmem:[%s2989_s22] sm:$0xff]  ;;  %v2998_v8 = vsel %vm276_vm0, %v259_v5, 0  ;;  %v3001_v9 = vsel %vm276_vm0, %v260_v6, 0  ;;  %v244_v10 = vld [vmem:[%s2989_s22 + $0x8] sm:$0xff]  ;;  %v262_v13 = vld [vmem:[%s2989_s22 + $0x98] sm:$0xff]  ;;  %2443 = vmatprep.mubr.f32.mxu0 %v2992_v4  ;;  %v3019_v20 = vsel %vm276_vm0, %v261_v12, 0  ;;  %v476_v0 = vsub.f32 %v2984_v3, %v2992_v4  ;;  %p2805_p9 = scmp.ne.s32.totalorder %s3596_s12, %s2804_s17 }
  0x2f   : > { %v3005_v11 = vsel %vm276_vm0, %v243_v7, 0  ;;  %v425_v14 = vand.u32 4294901760, %v2998_v8  ;;  %v428_v15 = vand.u32 4294901760, %v3001_v9  ;;  %v3013_v16 = vsel %vm276_vm0, %v244_v10, 0  ;;  %v245_v18 = vld [vmem:[%s2989_s22 + $0x10] sm:$0xff]  ;;  %v246_v22 = vld [vmem:[%s2989_s22 + $0x18] sm:$0xff] }
  0x30   : > { %v377_v17 = vand.u32 4294901760, %v3005_v11  ;;  %v380_v19 = vand.u32 4294901760, %v3013_v16  ;;  %v3022_v21 = vsel %vm276_vm0, %v262_v13, 0  ;;  %v263_v23 = vld [vmem:[%s2989_s22 + $0xa0] sm:$0xff]  ;;  %v264_v24 = vld [vmem:[%s2989_s22 + $0xa8] sm:$0xff]  ;;  %v3034_v26 = vsel %vm276_vm0, %v245_v18, 0  ;;  %p2806_p10 = pnand %p2805_p9, %p2944_p5 }
  0x31   : > { %v3031_v25 = vpack.c.bf16 %v428_v15, %v425_v14  ;;  %v431_v28 = vand.u32 4294901760, %v3019_v20  ;;  %v434_v29 = vand.u32 4294901760, %v3022_v21  ;;  %v3047_v30 = vsel %vm276_vm0, %v246_v22, 0  ;;  %v247_v38 = vld [vmem:[%s2989_s22 + $0x20] sm:$0xff]  ;;  %v248_v39 = vld [vmem:[%s2989_s22 + $0x28] sm:$0xff]  ;;  %v265_v40 = vld [vmem:[%s2989_s22 + $0xb0] sm:$0xff] }
  0x32   : > { %v3040_v27 = vpack.c.bf16 %v380_v19, %v377_v17  ;;  %v3050_v31 = vsel %vm276_vm0, %v263_v23, 0  ;;  %v3053_v32 = vsel %vm276_vm0, %v264_v24, 0  ;;  %v383_v34 = vand.u32 4294901760, %v3034_v26  ;;  %v266_v41 = vld [vmem:[%s2989_s22 + $0xb8] sm:$0xff]  ;;  %v249_v52 = vld [vmem:[%s2989_s22 + $0x30] sm:$0xff]  ;;  %v267_v54 = vld [vmem:[%s2989_s22 + $0xc0] sm:$0xff]  ;;  %p2807_p12 = pneg %p2806_p10 }
  0x33   : > { %2514 = vmatprep.subr.bf16.mxu1 %v3031_v25  ;;  %2610 = vmatprep.subr.bf16.mxu0 %v3031_v25  ;;  %v3061_v33 = vpack.c.bf16 %v434_v29, %v431_v28  ;;  %v386_v35 = vand.u32 4294901760, %v3047_v30  ;;  %v3655_v36 = vand.u32 4294901760, %v3050_v31  ;;  %v3654_v37 = vand.u32 4294901760, %v3053_v32  ;;  %v250_v53 = vld [vmem:[%s2989_s22 + $0x38] sm:$0xff]  ;;  %v268_v55 = vld [vmem:[%s2989_s22 + $0xc8] sm:$0xff]  ;;  %v251_v6 = vld [vmem:[%s2989_s22 + $0x40] sm:$0xff] }
  0x34   : > { %2516 = vmatpush3.bf16.xpose.msra.mxu1 %v3040_v27  ;;  %2612 = vmatpush3.bf16.xpose.msra.mxu0 %v3040_v27  ;;  %v3086_v44 = vsel %vm276_vm0, %v247_v38, 0  ;;  %v3089_v45 = vsel %vm276_vm0, %v248_v39, 0  ;;  %v3092_v46 = vsel %vm276_vm0, %v265_v40, 0  ;;  %v3095_v47 = vsel %vm276_vm0, %v266_v41, 0  ;;  %v252_v7 = vld [vmem:[%s2989_s22 + $0x48] sm:$0xff]  ;;  %v269_v10 = vld [vmem:[%s2989_s22 + $0xd0] sm:$0xff] }
  0x35   : > { %2518 = vmatprep.subr.bf16.mxu1 %v3061_v33  ;;  %2614 = vmatprep.subr.bf16.mxu0 %v3061_v33  ;;  %v3077_v42 = vpack.c.bf16 %v386_v35, %v383_v34  ;;  %v3083_v43 = vpack.c.bf16 %v3654_v37, %v3655_v36  ;;  %v3653_v48 = vand.u32 4294901760, %v3086_v44  ;;  %v3652_v49 = vand.u32 4294901760, %v3089_v45  ;;  %v270_v12 = vld [vmem:[%s2989_s22 + $0xd8] sm:$0xff] }
  0x36   : > { %v3651_v50 = vand.u32 4294901760, %v3092_v46  ;;  %v3650_v51 = vand.u32 4294901760, %v3095_v47  ;;  %v3122_v58 = vsel %vm276_vm0, %v249_v52, 0  ;;  %v3125_v59 = vsel %vm276_vm0, %v250_v53, 0 }
  0x37   : > { %3673 = vst [vmem:[#allocation9_spill] sm:$0xff] %v3077_v42  ;;  %3674 = vst [vmem:[#allocation10_spill] sm:$0xff] %v3083_v43  ;;  %v3113_v56 = vpack.c.bf16 %v3652_v49, %v3653_v48  ;;  %v3128_v60 = vsel %vm276_vm0, %v267_v54, 0  ;;  %v3131_v61 = vsel %vm276_vm0, %v268_v55, 0  ;;  %v3649_v62 = vand.u32 4294901760, %v3122_v58  ;;  %v253_v54 = vld [vmem:[%s2989_s22 + $0x50] sm:$0xff] }
  0x38   : > { %v3119_v57 = vpack.c.bf16 %v3650_v51, %v3651_v50  ;;  %v3648_v63 = vand.u32 4294901760, %v3125_v59  ;;  %v3643_v1 = vand.u32 4294901760, %v3128_v60  ;;  %v3642_v5 = vand.u32 4294901760, %v3131_v61  ;;  %v254_v55 = vld [vmem:[%s2989_s22 + $0x58] sm:$0xff] }
  0x39   : > { %3675 = vst [vmem:[#allocation11_spill] sm:$0xff] %v3113_v56  ;;  %v3153_v18 = vand.u32 4294901760, %v476_v0  ;;  %v3162_v23 = vsel %vm276_vm0, %v251_v6, 0  ;;  %v3165_v24 = vsel %vm276_vm0, %v252_v7, 0  ;;  %v3168_v38 = vsel %vm276_vm0, %v269_v10, 0  ;;  %v271_v0 = vld [vmem:[%s2989_s22 + $0xe0] sm:$0xff] }
  0x3a   : > { %3676 = vst [vmem:[#allocation12_spill] sm:$0xff] %v3119_v57  ;;  %v3151_v13 = vpack.c.bf16 %v3648_v63, %v3649_v62  ;;  %v3159_v22 = vpack.c.bf16 %v3642_v5, %v3643_v1  ;;  %v3171_v39 = vsel %vm276_vm0, %v270_v12, 0  ;;  %v3647_v40 = vand.u32 4294901760, %v3162_v23  ;;  %v272_v6 = vld [vmem:[%s2989_s22 + $0xe8] sm:$0xff]  ;;  %v274_v63 = vld [vmem:[%s2989_s22 + $0xf8] sm:$0xff] }
  0x3b   : > { %2341 = vmatprep.mubr.f32.mxu1 %v3153_v18  ;;  %v3644_v41 = vand.u32 4294901760, %v3165_v24  ;;  %v3646_v52 = vand.u32 4294901760, %v3168_v38  ;;  %v3645_v53 = vand.u32 4294901760, %v3171_v39  ;;  %v3199_v12 = vsel %vm276_vm0, %v253_v54, 0 }
  0x3c   : > { %2520 = vmatpush3.bf16.xpose.msra.mxu1 %v3077_v42  ;;  %2616 = vmatpush3.bf16.xpose.msra.mxu0 %v3077_v42  ;;  %3677 = vst [vmem:[#allocation13_spill] sm:$0xff] %v3151_v13  ;;  %3678 = vst [vmem:[#allocation14_spill] sm:$0xff] %v3159_v22  ;;  %v3202_v5 = vsel %vm276_vm0, %v254_v55, 0  ;;  %v3205_v1 = vsel %vm276_vm0, %v271_v0, 0  ;;  %v255_v0 = vld [vmem:[%s2989_s22 + $0x60] sm:$0xff]  ;;  %v3225_v62 = vsub.f32 %v2998_v8, %v425_v14  ;;  %v374_v14 = vsel %vm276_vm0, %v274_v63, 0 }
  0x3d   : > { %2522 = vmatprep.subr.bf16.mxu1 %v3083_v43  ;;  %2618 = vmatprep.subr.bf16.mxu0 %v3083_v43  ;;  %v3190_v7 = vpack.c.bf16 %v3644_v41, %v3647_v40  ;;  %v3196_v10 = vpack.c.bf16 %v3645_v53, %v3646_v52  ;;  %v3208_v41 = vsel %vm276_vm0, %v272_v6, 0  ;;  %v407_v53 = vand.u32 4294901760, %v3199_v12  ;;  %v256_v40 = vld [vmem:[%s2989_s22 + $0x68] sm:$0xff]  ;;  %v273_v6 = vld [vmem:[%s2989_s22 + $0xf0] sm:$0xff] }
  0x3e   : > { %v410_v52 = vand.u32 4294901760, %v3202_v5  ;;  %v461_v54 = vand.u32 4294901760, %v3205_v1  ;;  %v464_v55 = vand.u32 4294901760, %v3208_v41  ;;  %v3232_v50 = vsub.f32 %v3001_v9, %v428_v15 }
  0x3f   : > { %3679 = vst [vmem:[#allocation15_spill] sm:$0xff] %v3190_v7  ;;  %3680 = vst [vmem:[#allocation16_spill] sm:$0xff] %v3196_v10  ;;  %v317_v48 = vsel %vm276_vm0, %v255_v0, 0  ;;  %v320_v37 = vsel %vm276_vm0, %v256_v40, 0  ;;  %v3241_v36 = vsub.f32 %v3005_v11, %v377_v17  ;;  %v371_v8 = vsel %vm276_vm0, %v273_v6, 0 }
  0x40   : > { %v3227_v51 = vpack.c.bf16 %v410_v52, %v407_v53  ;;  %v3234_v49 = vpack.c.bf16 %v464_v55, %v461_v54  ;;  %v3248_v9 = vsub.f32 %v3013_v16, %v380_v19  ;;  %v3253_v15 = vsub.f32 %v3019_v20, %v431_v28 }
  0x41   : > { %v3258_v11 = vsub.f32 %v3022_v21, %v434_v29  ;;  %v3263_v17 = vsub.f32 %v3034_v26, %v383_v34  ;;  %v3268_v16 = vsub.f32 %v3047_v30, %v386_v35  ;;  %v3683_v19 = vand.u32 4294901760, %v3050_v31  ;;  %v257_v34 = vld [vmem:[%s2989_s22 + $0x70] sm:$0xff]  ;;  %v258_v30 = vld [vmem:[%s2989_s22 + $0x78] sm:$0xff]  ;;  %s2875_s22 = smov [#allocation5]  }
  0x42   : > { %3681 = vst [vmem:[#allocation17_spill] sm:$0xff] %v3227_v51  ;;  %3682 = vst [vmem:[#allocation18_spill] sm:$0xff] %v3234_v49  ;;  %v413_v21 = vand.u32 4294901760, %v317_v48  ;;  %v416_v28 = vand.u32 4294901760, %v320_v37  ;;  %v467_v26 = vand.u32 4294901760, %v371_v8  ;;  %v470_v29 = vand.u32 4294901760, %v374_v14 }
  0x43   : > { %v3273_v20 = vsub.f32 %v3050_v31, %v3683_v19  ;;  %v599_v35 = vand.u32 4294901760, %v3225_v62  ;;  %v606_v63 = vand.u32 4294901760, %v3232_v50  ;;  %v3684_v31 = vand.u32 4294901760, %v3053_v32  ;;  %s2808_s23 = sshll.u32 %s2875_s22, 4  ;;  %s2809_s23 = int_to_ptr.vmem [resolvable:$false] %s2808_s23 }
  0x44   : > { %2524 = vmatpush3.bf16.xpose.msra.mxu1 %v3113_v56  ;;  %2620 = vmatpush3.bf16.xpose.msra.mxu0 %v3113_v56  ;;  %v3685_v0 = vand.u32 4294901760, %v3086_v44  ;;  %v3686_v19 = vand.u32 4294901760, %v3089_v45  ;;  %v3360_v3 = vsub.f32 %v3199_v12, %v407_v53  ;;  %s2810_s25 = scalar_lea.vmem %s2809_s23, 64  ;;  %p2811_p13 = scmp.lt.s32.totalorder %s3596_s12, %s2809_s23 }
  0x45   : > { %2526 = vmatprep.subr.bf16.mxu1 %v3119_v57  ;;  %2622 = vmatprep.subr.bf16.mxu0 %v3119_v57  ;;  %v3286_v40 = vsub.f32 %v3053_v32, %v3684_v31  ;;  %v3689_v31 = vand.u32 4294901760, %v3122_v58  ;;  %v3697_v57 = vand.u32 4294901760, %v3171_v39  ;;  %p2812_p0 = scmp.lt.s32.totalorder %s2810_s25, %s2804_s17 }
  0x46   : > { %v3291_v6 = vsub.f32 %v3086_v44, %v3685_v0  ;;  %v3690_v0 = vand.u32 4294901760, %v3125_v59 }
  0x47   : > { %v3311_v44 = vsub.f32 %v3122_v58, %v3689_v31  ;;  %v323_v58 = vsel %vm276_vm0, %v257_v34, 0  ;;  %v326_v31 = vsel %vm276_vm0, %v258_v30, 0  ;;  %v3696_v34 = vand.u32 4294901760, %v3168_v38  ;;  %p2813_p1 = por %p2812_p0, %p2811_p13 }
  0x48   : > { %v3355_v56 = vsub.f32 %v3171_v39, %v3697_v57  ;;  %v419_v43 = vand.u32 4294901760, %v323_v58  ;;  %v422_v42 = vand.u32 4294901760, %v326_v31  ;;  %v620_v57 = vand.u32 4294901760, %v3258_v11 }
  0x49   : > { %v3350_v30 = vsub.f32 %v3168_v38, %v3696_v34  ;;  %v3366_v38 = vsub.f32 %v3205_v1, %v461_v54  ;;  %v3372_v39 = vsub.f32 %v3208_v41, %v464_v55  ;;  %v3379_v1 = vsub.f32 %v320_v37, %v416_v28  ;;  %p2814_p2 = pnand %p2813_p1, %p2807_p12 }
  0x4a   : > { %v3381_v54 = vsub.f32 %v371_v8, %v467_v26  ;;  %v3385_v34 = vpack.c.bf16 %v422_v42, %v419_v43  ;;  %v3387_v41 = vsub.f32 %v323_v58, %v419_v43  ;;  %v2577_v37 = vpack.c.bf16 %v3232_v50, %v3225_v62 }
  0x4c   : > { %2528 = vmatpush3.bf16.xpose.msra.mxu1 %v3151_v13  ;;  %2624 = vmatpush3.bf16.xpose.msra.mxu0 %v3151_v13 }
  0x4d   : > { %2530 = vmatprep.subr.bf16.mxu1 %v3159_v22  ;;  %2626 = vmatprep.subr.bf16.mxu0 %v3159_v22  ;;  %v3332_v22 = vpack.c.bf16 %v470_v29, %v467_v26 }
  0x4f   : > { %3693 = vst [vmem:[#allocation19_spill] sm:$0xff] %v3332_v22 }
  0x54   : > { %2532 = vmatpush3.bf16.xpose.msra.mxu1 %v3190_v7  ;;  %2628 = vmatpush3.bf16.xpose.msra.mxu0 %v3190_v7  ;;  %v3688_v7 = vand.u32 4294901760, %v3095_v47 }
  0x55   : > { %2534 = vmatprep.subr.bf16.mxu1 %v3196_v10  ;;  %2630 = vmatprep.subr.bf16.mxu0 %v3196_v10 }
  0x56   : > { %v3306_v32 = vsub.f32 %v3095_v47, %v3688_v7  ;;  %v3328_v7 = vpack.c.bf16 %v416_v28, %v413_v21  ;;  %v508_v28 = vand.u32 4294901760, %v3268_v16 }
  0x58   : > { %v509_v58 = vsub.f32 %v3268_v16, %v508_v28 }
  0x5c   : > { %2536 = vmatpush3.bf16.xpose.msra.mxu1 %v3227_v51  ;;  %2632 = vmatpush3.bf16.xpose.msra.mxu0 %v3227_v51  ;;  %v3687_v51 = vand.u32 4294901760, %v3092_v46 }
  0x5d   : > { %2538 = vmatprep.subr.bf16.mxu1 %v3234_v49  ;;  %2634 = vmatprep.subr.bf16.mxu0 %v3234_v49  ;;  %v3296_v49 = vsub.f32 %v3089_v45, %v3686_v19  ;;  %v3316_v45 = vsub.f32 %v3125_v59, %v3690_v0  ;;  %v3691_v19 = vand.u32 4294901760, %v3128_v60  ;;  %v600_v59 = vsub.f32 %v3225_v62, %v599_v35  ;;  %v3702_v62 = vld [vmem:[#allocation9_spill] sm:$0xff] }
  0x5e   : > { %v3301_v10 = vsub.f32 %v3092_v46, %v3687_v51  ;;  %v3692_v51 = vand.u32 4294901760, %v3131_v61  ;;  %v607_v0 = vsub.f32 %v3232_v50, %v606_v63  ;;  %v3700_v50 = vld [vmem:[#allocation8_spill] sm:$0xff] }
  0x5f   : > { %v3321_v46 = vsub.f32 %v3128_v60, %v3691_v19  ;;  %v487_v60 = vand.u32 4294901760, %v3241_v36  ;;  %v3694_v19 = vand.u32 4294901760, %v3162_v23  ;;  %v601_v53 = vand.u32 4294901760, %v600_v59 }
  0x60   : > { %v3326_v47 = vsub.f32 %v3131_v61, %v3692_v51  ;;  %v3695_v61 = vand.u32 4294901760, %v3165_v24  ;;  %v608_v12 = vand.u32 4294901760, %v607_v0  ;;  %v3391_v59 = vsub.f32 %v326_v31, %v422_v42 }
  0x61   : > { %v3340_v13 = vsub.f32 %v3162_v23, %v3694_v19  ;;  %v494_v23 = vand.u32 4294901760, %v3248_v9  ;;  %v613_v19 = vand.u32 4294901760, %v3253_v15  ;;  %v2641_v0 = vpack.c.bf16 %v606_v63, %v599_v35 }
  0x62   : > { %v3345_v51 = vsub.f32 %v3165_v24, %v3695_v61  ;;  %v3363_v24 = vsub.f32 %v3202_v5, %v410_v52  ;;  %v488_v5 = vsub.f32 %v3241_v36, %v487_v60  ;;  %v3377_v52 = vsub.f32 %v317_v48, %v413_v21 }
  0x63   : > { %v3383_v61 = vsub.f32 %v374_v14, %v470_v29  ;;  %v495_v55 = vsub.f32 %v3248_v9, %v494_v23  ;;  %v621_v48 = vsub.f32 %v3258_v11, %v620_v57  ;;  %v2545_v8 = vpack.c.bf16 %v608_v12, %v601_v53 }
  0x64   : > { %2540 = vmatpush3.bf16.xpose.msra.mxu1 %v3328_v7  ;;  %2636 = vmatpush3.bf16.xpose.msra.mxu0 %v3328_v7  ;;  %v489_v21 = vand.u32 4294901760, %v488_v5  ;;  %v501_v14 = vand.u32 4294901760, %v3263_v17  ;;  %v634_v31 = vand.u32 4294901760, %v3286_v40  ;;  %v2603_v5 = vpack.c.bf16 %v3379_v1, %v3377_v52 }
  0x65   : > { %2542 = vmatprep.subr.bf16.mxu1 %v3332_v22  ;;  %2638 = vmatprep.subr.bf16.mxu0 %v3332_v22  ;;  %v614_v22 = vsub.f32 %v3253_v15, %v613_v19  ;;  %v496_v35 = vand.u32 4294901760, %v495_v55  ;;  %v622_v53 = vand.u32 4294901760, %v621_v48  ;;  %v627_v55 = vand.u32 4294901760, %v3273_v20 }
  0x66   : > { %v2643_v29 = vpack.c.bf16 %v494_v23, %v487_v60  ;;  %v502_v42 = vsub.f32 %v3263_v17, %v501_v14  ;;  %v2645_v48 = vpack.c.bf16 %v620_v57, %v613_v19  ;;  %v635_v12 = vsub.f32 %v3286_v40, %v634_v31 }
  0x67   : > { %v615_v63 = vand.u32 4294901760, %v614_v22  ;;  %v2547_v22 = vpack.c.bf16 %v496_v35, %v489_v21  ;;  %v628_v43 = vsub.f32 %v3273_v20, %v627_v55  ;;  %v515_v60 = vand.u32 4294901760, %v3291_v6 }
  0x68   : > { %v522_v23 = vand.u32 4294901760, %v3296_v49  ;;  %v636_v19 = vand.u32 4294901760, %v635_v12  ;;  %v641_v57 = vand.u32 4294901760, %v3301_v10  ;;  %v648_v35 = vand.u32 4294901760, %v3306_v32 }
  0x69   : > { %v2549_v26 = vpack.c.bf16 %v622_v53, %v615_v63  ;;  %v629_v21 = vand.u32 4294901760, %v628_v43 }
  0x6a   : > { %v649_v43 = vsub.f32 %v3306_v32, %v648_v35 }
  0x6b   : > { %v2553_v63 = vpack.c.bf16 %v636_v19, %v629_v21 }
  0x6c   : > { %2544 = vmatpush3.bf16.xpose.msra.mxu1 %v3385_v34  ;;  %2640 = vmatpush3.bf16.xpose.msra.mxu0 %v3385_v34 }
  0x6d   : > { %2546 = vmatprep.subr.bf16.mxu1 %v2545_v8  ;;  %2642 = vmatprep.subr.bf16.mxu0 %v2641_v0  ;;  %v503_v8 = vand.u32 4294901760, %v502_v42  ;;  %v510_v0 = vand.u32 4294901760, %v509_v58  ;;  %v516_v42 = vsub.f32 %v3291_v6, %v515_v60  ;;  %v2649_v58 = vpack.c.bf16 %v634_v31, %v627_v55 }
  0x6e   : > { %v662_v31 = vand.u32 4294901760, %v3326_v47 }
  0x6f   : > { %v517_v53 = vand.u32 4294901760, %v516_v42 }
  0x73   : > { %2342 = vmatmul.mubr.f32.vlgmr.msra.gmra.mrb[0].mxu1 %v3153_v18  ;;  %2444 = vmatmul.mubr.f32.vlgmr.msra.gmra.mrb[0].mxu0 %v2992_v4  ;;  %v2551_v4 = vpack.c.bf16 %v510_v0, %v503_v8  ;;  %v2647_v18 = vpack.c.bf16 %v508_v28, %v501_v14  ;;  %v650_v28 = vand.u32 4294901760, %v649_v43  ;;  %v655_v8 = vand.u32 4294901760, %v3321_v46 }
  0x74   : > { %2548 = vmatpush3.bf16.xpose.msra.mxu1 %v2547_v22  ;;  %2644 = vmatpush3.bf16.xpose.msra.mxu0 %v2643_v29  ;;  %v523_v29 = vsub.f32 %v3296_v49, %v522_v23  ;;  %v529_v22 = vand.u32 4294901760, %v3311_v44  ;;  %v2651_v0 = vpack.c.bf16 %v522_v23, %v515_v60  ;;  %v550_v43 = vand.u32 4294901760, %v3345_v51 }
  0x75   : > { %2550 = vmatprep.subr.bf16.mxu1 %v2549_v26  ;;  %2646 = vmatprep.subr.bf16.mxu0 %v2645_v48  ;;  %v642_v26 = vsub.f32 %v3301_v10, %v641_v57  ;;  %v536_v48 = vand.u32 4294901760, %v3316_v45  ;;  %v656_v42 = vsub.f32 %v3321_v46, %v655_v8 }
  0x76   : > { %2375 = vmatprep.mubr.f32.mxu1 %v2980_v2  ;;  %2477 = vmatprep.mubr.f32.mxu0 %v2980_v2  ;;  %v524_v12 = vand.u32 4294901760, %v523_v29  ;;  %v530_v21 = vsub.f32 %v3311_v44, %v529_v22  ;;  %v663_v29 = vsub.f32 %v3326_v47, %v662_v31 }
  0x77   : > { %v643_v14 = vand.u32 4294901760, %v642_v26  ;;  %v537_v19 = vsub.f32 %v3316_v45, %v536_v48  ;;  %v543_v26 = vand.u32 4294901760, %v3340_v13  ;;  %v657_v60 = vand.u32 4294901760, %v656_v42 }
  0x78   : > { %v2555_v55 = vpack.c.bf16 %v524_v12, %v517_v53  ;;  %v664_v23 = vand.u32 4294901760, %v663_v29  ;;  %v669_v53 = vand.u32 4294901760, %v3350_v30  ;;  %v2655_v12 = vpack.c.bf16 %v536_v48, %v529_v22 }
  0x79   : > { %v557_v42 = vand.u32 4294901760, %v3360_v3  ;;  %v564_v29 = vand.u32 4294901760, %v3363_v24 }
  0x7c   : > { %2552 = vmatpush3.bf16.xpose.msra.mxu1 %v2551_v4  ;;  %2648 = vmatpush3.bf16.xpose.msra.mxu0 %v2647_v18  ;;  %v2557_v4 = vpack.c.bf16 %v650_v28, %v643_v14  ;;  %v2653_v18 = vpack.c.bf16 %v648_v35, %v641_v57  ;;  %v676_v57 = vand.u32 4294901760, %v3355_v56  ;;  %v544_v14 = vsub.f32 %v3340_v13, %v543_v26 }
  0x7d   : > { %2554 = vmatprep.subr.bf16.mxu1 %v2553_v63  ;;  %2650 = vmatprep.subr.bf16.mxu0 %v2649_v58  ;;  %v531_v63 = vand.u32 4294901760, %v530_v21  ;;  %v538_v58 = vand.u32 4294901760, %v537_v19  ;;  %v551_v28 = vsub.f32 %v3345_v51, %v550_v43  ;;  %v670_v21 = vsub.f32 %v3350_v30, %v669_v53 }
  0x7e   : > { %v677_v19 = vsub.f32 %v3355_v56, %v676_v57 }
  0x7f   : > { %v2559_v35 = vpack.c.bf16 %v538_v58, %v531_v63  ;;  %v671_v22 = vand.u32 4294901760, %v670_v21  ;;  %v683_v63 = vand.u32 4294901760, %v3366_v38  ;;  %v2659_v58 = vpack.c.bf16 %v550_v43, %v543_v26 }
  0x80   : > { %v678_v48 = vand.u32 4294901760, %v677_v19  ;;  %v571_v21 = vand.u32 4294901760, %v3377_v52  ;;  %v578_v19 = vand.u32 4294901760, %v3379_v1 }
  0x84   : > { %2556 = vmatpush3.bf16.xpose.msra.mxu1 %v2555_v55  ;;  %2652 = vmatpush3.bf16.xpose.msra.mxu0 %v2651_v0  ;;  %v2561_v55 = vpack.c.bf16 %v664_v23, %v657_v60  ;;  %v2657_v0 = vpack.c.bf16 %v662_v31, %v655_v8  ;;  %v690_v8 = vand.u32 4294901760, %v3372_v39  ;;  %v558_v60 = vsub.f32 %v3360_v3, %v557_v42 }
  0x85   : > { %2558 = vmatprep.subr.bf16.mxu1 %v2557_v4  ;;  %2654 = vmatprep.subr.bf16.mxu0 %v2653_v18  ;;  %v545_v4 = vand.u32 4294901760, %v544_v14  ;;  %v552_v18 = vand.u32 4294901760, %v551_v28  ;;  %v565_v23 = vsub.f32 %v3363_v24, %v564_v29  ;;  %v684_v14 = vsub.f32 %v3366_v38, %v683_v63 }
  0x86   : > { %v691_v28 = vsub.f32 %v3372_v39, %v690_v8 }
  0x87   : > { %v2563_v31 = vpack.c.bf16 %v552_v18, %v545_v4  ;;  %v685_v26 = vand.u32 4294901760, %v684_v14  ;;  %v697_v4 = vand.u32 4294901760, %v3381_v54  ;;  %v2663_v18 = vpack.c.bf16 %v564_v29, %v557_v42 }
  0x88   : > { %v692_v43 = vand.u32 4294901760, %v691_v28  ;;  %v585_v14 = vand.u32 4294901760, %v3387_v41  ;;  %v592_v28 = vand.u32 4294901760, %v3391_v59 }
  0x8c   : > { %2560 = vmatpush3.bf16.xpose.msra.mxu1 %v2559_v35  ;;  %2656 = vmatpush3.bf16.xpose.msra.mxu0 %v2655_v12  ;;  %v2565_v35 = vpack.c.bf16 %v678_v48, %v671_v22  ;;  %v2661_v12 = vpack.c.bf16 %v676_v57, %v669_v53  ;;  %v704_v53 = vand.u32 4294901760, %v3383_v61  ;;  %v572_v22 = vsub.f32 %v3377_v52, %v571_v21 }
  0x8d   : > { %2562 = vmatprep.subr.bf16.mxu1 %v2561_v55  ;;  %2658 = vmatprep.subr.bf16.mxu0 %v2657_v0  ;;  %v559_v55 = vand.u32 4294901760, %v558_v60  ;;  %v566_v0 = vand.u32 4294901760, %v565_v23  ;;  %v579_v48 = vsub.f32 %v3379_v1, %v578_v19  ;;  %v698_v60 = vsub.f32 %v3381_v54, %v697_v4 }
  0x8e   : > { %v705_v23 = vsub.f32 %v3383_v61, %v704_v53 }
  0x8f   : > { %v2567_v57 = vpack.c.bf16 %v566_v0, %v559_v55  ;;  %v699_v42 = vand.u32 4294901760, %v698_v60  ;;  %v2667_v0 = vpack.c.bf16 %v578_v19, %v571_v21  ;;  %v3698_v21 = vpack.c.bf16 %v3248_v9, %v3241_v36 }
  0x90   : > { %v706_v29 = vand.u32 4294901760, %v705_v23  ;;  %v3699_v19 = vpack.c.bf16 %v3258_v11, %v3253_v15  ;;  %v3703_v36 = vpack.c.bf16 %v3286_v40, %v3273_v20  ;;  %v3705_v9 = vpack.c.bf16 %v3296_v49, %v3291_v6  ;;  %v3708_v11 = vld [vmem:[#allocation12_spill] sm:$0xff]  ;;  %v3712_v49 = vld [vmem:[#allocation14_spill] sm:$0xff] }
  0x91   : > { %v3707_v15 = vpack.c.bf16 %v3306_v32, %v3301_v10  ;;  %v3711_v20 = vpack.c.bf16 %v3326_v47, %v3321_v46  ;;  %v3713_v40 = vpack.c.bf16 %v3345_v51, %v3340_v13  ;;  %v3714_v10 = vld [vmem:[#allocation15_spill] sm:$0xff]  ;;  %v3715_v6 = vpack.c.bf16 %v3355_v56, %v3350_v30  ;;  %v3716_v32 = vld [vmem:[#allocation16_spill] sm:$0xff]  ;;  %v3720_v13 = vld [vmem:[#allocation18_spill] sm:$0xff] }
  0x92   : > { %v3719_v46 = vpack.c.bf16 %v3372_v39, %v3366_v38  ;;  %v3721_v56 = vpack.c.bf16 %v3383_v61, %v3381_v54  ;;  %v3723_v47 = vpack.c.bf16 %v3391_v59, %v3387_v41  ;;  %v2873_v51 = vmov 0.0   ;;  %v1710_v30 = vld [vmem:[%s3639_s3] sm:$0x1] }
  0x93   : > { %v1712_v38 = vsel %vm1234_vm1, %v1710_v30, 0  ;;  %v275_v54 = vstv %s240_s6 }
  0x94   : > { %2564 = vmatpush3.bf16.xpose.msra.mxu1 %v2563_v31  ;;  %2660 = vmatpush3.bf16.xpose.msra.mxu0 %v2659_v58  ;;  %v2569_v31 = vpack.c.bf16 %v692_v43, %v685_v26  ;;  %v2665_v58 = vpack.c.bf16 %v690_v8, %v683_v63  ;;  %v586_v63 = vsub.f32 %v3387_v41, %v585_v14 }
  0x95   : > { %2566 = vmatprep.subr.bf16.mxu1 %v2565_v35  ;;  %2662 = vmatprep.subr.bf16.mxu0 %v2661_v12  ;;  %v573_v35 = vand.u32 4294901760, %v572_v22  ;;  %v580_v12 = vand.u32 4294901760, %v579_v48  ;;  %v593_v8 = vsub.f32 %v3391_v59, %v592_v28  ;;  %v2573_v26 = vpack.c.bf16 %v706_v29, %v699_v42 }
  0x96   : > { %v2669_v43 = vpack.c.bf16 %v704_v53, %v697_v4  ;;  %v2671_v48 = vpack.c.bf16 %v592_v28, %v585_v14 }
  0x97   : > { %v2571_v55 = vpack.c.bf16 %v580_v12, %v573_v35 }
  0x9c   : > { %2568 = vmatpush3.bf16.xpose.msra.mxu1 %v2567_v57  ;;  %2664 = vmatpush3.bf16.xpose.msra.mxu0 %v2663_v18  ;;  %v587_v57 = vand.u32 4294901760, %v586_v63  ;;  %v594_v18 = vand.u32 4294901760, %v593_v8 }
  0x9d   : > { %2570 = vmatprep.subr.bf16.mxu1 %v2569_v31  ;;  %2666 = vmatprep.subr.bf16.mxu0 %v2665_v58 }
  0x9e   : > { %v2575_v22 = vpack.c.bf16 %v594_v18, %v587_v57 }
  0xa4   : > { %2572 = vmatpush3.bf16.xpose.msra.mxu1 %v2571_v55  ;;  %2668 = vmatpush3.bf16.xpose.msra.mxu0 %v2667_v0 }
  0xa5   : > { %2574 = vmatprep.subr.bf16.mxu1 %v2573_v26  ;;  %2670 = vmatprep.subr.bf16.mxu0 %v2669_v43 }
  0xac   : > { %2576 = vmatpush3.bf16.xpose.msra.mxu1 %v2575_v22  ;;  %2672 = vmatpush3.bf16.xpose.msra.mxu0 %v2671_v48 }
  0xad   : > { %2578 = vmatprep.subr.bf16.mxu1 %v2577_v37  ;;  %2674 = vmatprep.subr.bf16.mxu0 %v3031_v25  ;;  %v3701_v25 = vpack.c.bf16 %v3268_v16, %v3263_v17  ;;  %v3709_v17 = vpack.c.bf16 %v3316_v45, %v3311_v44  ;;  %v3710_v16 = vld [vmem:[#allocation13_spill] sm:$0xff]  ;;  %v3717_v44 = vpack.c.bf16 %v3363_v24, %v3360_v3  ;;  %v3722_v3 = vld [vmem:[#allocation19_spill] sm:$0xff] }
  0xae   : > { %v3718_v45 = vld [vmem:[#allocation17_spill] sm:$0xff] }
  0xb3   : > { %2376 = vmatmul.mubr.f32.vlgmr.msra.gmra.mrb[0].mxu1 %v2980_v2  ;;  %2478 = vmatmul.mubr.f32.vlgmr.msra.gmra.mrb[0].mxu0 %v2980_v2 }
  0xb4   : > { %2580 = vmatpush3.bf16.xpose.msra.mxu1 %v3698_v21  ;;  %2676 = vmatpush3.bf16.xpose.msra.mxu0 %v3040_v27  ;;  %v3704_v27 = vld [vmem:[#allocation10_spill] sm:$0xff]  ;;  %v2874_v21 = vmov 1966171168  }
  0xb5   : > { %2582 = vmatprep.subr.bf16.mxu1 %v3699_v19  ;;  %2678 = vmatprep.subr.bf16.mxu0 %v3061_v33  ;;  %v3706_v33 = vld [vmem:[#allocation11_spill] sm:$0xff]  ;;  %v2188_v19 = vunpack.c.l.s4 %v2874_v21 }
  0xb6   : > { %2409 = vmatprep.mubr.f32.mxu1 %v3700_v50  ;;  %2511 = vmatprep.mubr.f32.mxu0 %v2980_v2 }
  0xbc   : > { %2584 = vmatpush3.bf16.xpose.msra.mxu1 %v3701_v25  ;;  %2680 = vmatpush3.bf16.xpose.msra.mxu0 %v3702_v62 }
  0xbd   : > { %2586 = vmatprep.subr.bf16.mxu1 %v3703_v36  ;;  %2682 = vmatprep.subr.bf16.mxu0 %v3704_v27  ;;  %v2181_v36 = vstv %s2302_s7 }
  0xc4   : > { %2588 = vmatpush3.bf16.xpose.msra.mxu1 %v3705_v9  ;;  %2684 = vmatpush3.bf16.xpose.msra.mxu0 %v3706_v33  ;;  %v2189_v9 = vunpack.c.0.s8 %v2188_v19 }
  0xc5   : > { %2590 = vmatprep.subr.bf16.mxu1 %v3707_v15  ;;  %2686 = vmatprep.subr.bf16.mxu0 %v3708_v11 }
  0xcc   : > { %2592 = vmatpush3.bf16.xpose.msra.mxu1 %v3709_v17  ;;  %2688 = vmatpush3.bf16.xpose.msra.mxu0 %v3710_v16 }
  0xcd   : > { %2594 = vmatprep.subr.bf16.mxu1 %v3711_v20  ;;  %2690 = vmatprep.subr.bf16.mxu0 %v3712_v49 }
  0xd4   : > { %2596 = vmatpush3.bf16.xpose.msra.mxu1 %v3713_v40  ;;  %2692 = vmatpush3.bf16.xpose.msra.mxu0 %v3714_v10 }
  0xd5   : > { %2598 = vmatprep.subr.bf16.mxu1 %v3715_v6  ;;  %2694 = vmatprep.subr.bf16.mxu0 %v3716_v32 }
  0xdc   : > { %2600 = vmatpush3.bf16.xpose.msra.mxu1 %v3717_v44  ;;  %2696 = vmatpush3.bf16.xpose.msra.mxu0 %v3718_v45 }
  0xdd   : > { %2602 = vmatprep.subr.bf16.mxu1 %v3719_v46  ;;  %2698 = vmatprep.subr.bf16.mxu0 %v3720_v13 }
  0xe4   : > { %2604 = vmatpush3.bf16.xpose.msra.mxu1 %v2603_v5  ;;  %2700 = vmatpush3.bf16.xpose.msra.mxu0 %v3328_v7  ;;  %v1233_v7 = vld [vmem:[%s3638_s2] sm:$0x1] }
  0xe5   : > { %2606 = vmatprep.subr.bf16.mxu1 %v3721_v56  ;;  %2702 = vmatprep.subr.bf16.mxu0 %v3722_v3  ;;  %v1236_v24 = vsel %vm1234_vm1, %v1233_v7, 0 }
  0xe6   : > { %v3562_v39 = vand.u32 4294901760, %v1236_v24 }
  0xe8   : > { %v1313_v52 = vsub.f32 %v1236_v24, %v3562_v39 }
  0xea   : > { %v1314_v5 = vand.u32 4294901760, %v1313_v52 }
  0xec   : > { %2608 = vmatpush3.bf16.xpose.msra.mxu1 %v3723_v47  ;;  %2704 = vmatpush3.bf16.xpose.msra.mxu0 %v3385_v34  ;;  %v1315_v23 = vsub.f32 %v1313_v52, %v1314_v5 }
  0xee   : > { %v1316_v55 = vand.u32 4294901760, %v1315_v23 }
  0xf3   : > { %2410 = vmatmul.mubr.f32.vlgmr.msra.gmra.mrb[0].mxu1 %v3700_v50  ;;  %2512 = vmatmul.mubr.f32.vlgmr.msra.gmra.mrb[0].mxu0 %v2980_v2  ;;  %v3564_v2 = vand.u32 4294901760, %v1712_v38  ;;  %v2190_v50 = vlaneseq }
  0xf4   : > { %1311 = vmatprep.mubr.f32.mxu0 %v2873_v51  ;;  %1780 = vmatprep.mubr.f32.mxu1 %v2873_v51 }
  0xf5   : > { %v3568_v1 = vsub.f32 %v1712_v38, %v3564_v2  ;;  %v2191_v33 = vshrl.u32 %v2190_v50, 7  ;;  %vm2204_vm3 = vcmp.lt.s32.totalorder %v2190_v50, 256 }
  0xf7   : > { %v1783_v4 = vand.u32 4294901760, %v3568_v1  ;;  %v2192_v49 = vsub.s32 %v2189_v9, %v2191_v33 }
  0xf9   : > { %v1784_v35 = vsub.f32 %v3568_v1, %v1783_v4 }
  0xfb   : > { %v1785_v0 = vand.u32 4294901760, %v1784_v35 }
 0x1c6   : > { %v848_v61 = vpop.f32.mrb[0].mxu1  ;;  %v1226_v34 = vpop.f32.mrb[0].mxu0 }
 0x1c7   : > { %v2705_v41 = vadd.f32 %v848_v61, %v275_v54  ;;  %v850_v59 = vpop.f32.mrb[1].mxu1  ;;  %v1228_v37 = vpop.f32.mrb[1].mxu0 }
 0x1c8   : > { %v2707_v53 = vadd.f32 %v850_v59, %v275_v54 }
 0x1c9   : > { %v2706_v31 = vadd.f32 %v2705_v41, %v1226_v34 }
 0x1ca   : > { %v2708_v58 = vadd.f32 %v2707_v53, %v1228_v37 }
 0x1cb   : > { %v1231_v60 = vmax.f32 %v2706_v31, 0.0 }
 0x1cc   : > { %v1232_v12 = vmax.f32 %v2708_v58, 0.0 }
 0x1cd   : > { %v1240_v14 = vsel %vm1238_vm2, %v1231_v60, 0 }
 0x1ce   : > { %v1247_v28 = vand.u32 4294901760, %v1240_v14  ;;  %v1243_v42 = vsel %vm1238_vm2, %v1232_v12, 0 }
 0x1cf   : > { %v1245_v29 = vand.u32 4294901760, %v1243_v42 }
 0x1d0   : > { %v1330_v63 = vsub.f32 %v1240_v14, %v1247_v28 }
 0x1d1   : > { %v1324_v8 = vsub.f32 %v1243_v42, %v1245_v29  ;;  %1246 = vmatprep.subr.mxu0 %v1245_v29  ;;  %1715 = vmatprep.subr.mxu1 %v1245_v29 }
 0x1d2   : > { %v1331_v26 = vand.u32 4294901760, %v1330_v63  ;;  %1248 = vmatpush1.msra.mxu0 %v1247_v28  ;;  %1717 = vmatpush1.msra.mxu1 %v1247_v28 }
 0x1d3   : > { %1317 = vmatmul.mubr.f32.vlgmr.msra.gmra.mrb[2].mxu0 %v1316_v55  ;;  %1786 = vmatmul.mubr.f32.vlgmr.msra.gmra.mrb[2].mxu1 %v1785_v0  ;;  %v1325_v43 = vand.u32 4294901760, %v1324_v8 }
 0x1d4   : > { %v1332_v57 = vsub.f32 %v1330_v63, %v1331_v26  ;;  %1397 = vmatprep.mubr.f32.mxu0 %v2873_v51  ;;  %1866 = vmatprep.mubr.f32.mxu1 %v2873_v51 }
 0x1d5   : > { %v1326_v18 = vsub.f32 %v1324_v8, %v1325_v43 }
 0x1d6   : > { %v1333_v48 = vand.u32 4294901760, %v1332_v57 }
 0x1d7   : > { %v1327_v22 = vand.u32 4294901760, %v1326_v18 }
 0x1d9   : > { %1328 = vmatprep.subr.mxu0 %v1327_v22  ;;  %1797 = vmatprep.subr.mxu1 %v1327_v22 }
 0x1da   : > { %1334 = vmatpush1.msra.mxu0 %v1333_v48  ;;  %1803 = vmatpush1.msra.mxu1 %v1333_v48 }
 0x1db   : > { %1399 = vmatmul.mubr.f32.vlgmr.msra.gmra.mrb[2].mxu0 %v3562_v39  ;;  %1407 = vmatprep.subr.mxu0 %v1324_v8 }
 0x1dc   : > { %1868 = vmatmul.mubr.f32.vlgmr.msra.gmra.mrb[2].mxu1 %v3564_v2  ;;  %1876 = vmatprep.subr.mxu1 %v1324_v8 }
 0x1dd   : > { %1410 = vmatpush1.msra.mxu0 %v1330_v63  ;;  %1879 = vmatpush1.msra.mxu1 %v1330_v63 }
 0x1de   : > { %1483 = vmatprep.subr.mxu0 %v1245_v29  ;;  %1952 = vmatprep.subr.mxu1 %v1245_v29 }
 0x1df   : > { %1473 = vmatprep.mubr.f32.mxu0 %v2873_v51  ;;  %1942 = vmatprep.mubr.f32.mxu1 %v2873_v51 }
 0x1e3   : > { %1476 = vmatmul.mubr.f32.vlgmr.msra.gmra.mrb[2].mxu0 %v1313_v52 }
 0x1e4   : > { %1485 = vmatpush1.msra.mxu0 %v1247_v28  ;;  %1945 = vmatmul.mubr.f32.vlgmr.msra.gmra.mrb[2].mxu1 %v3568_v1 }
 0x1e5   : > { %1954 = vmatpush1.msra.mxu1 %v1247_v28  ;;  %1561 = vmatprep.subr.mxu0 %v1325_v43 }
 0x1e6   : > { %2030 = vmatprep.subr.mxu1 %v1325_v43  ;;  %1548 = vmatprep.mubr.f32.mxu0 %v2873_v51 }
 0x1e7   : > { %2017 = vmatprep.mubr.f32.mxu1 %v2873_v51 }
 0x1eb   : > { %1552 = vmatmul.mubr.f32.vlgmr.msra.gmra.mrb[2].mxu0 %v1314_v5 }
 0x1ec   : > { %1565 = vmatpush1.msra.mxu0 %v1331_v26  ;;  %2021 = vmatmul.mubr.f32.vlgmr.msra.gmra.mrb[2].mxu1 %v1783_v4 }
 0x1ed   : > { %2034 = vmatpush1.msra.mxu1 %v1331_v26  ;;  %1637 = vmatprep.subr.mxu0 %v1245_v29 }
 0x1ee   : > { %2106 = vmatprep.subr.mxu1 %v1245_v29  ;;  %1628 = vmatprep.mubr.f32.mxu0 %v2873_v51 }
 0x1ef   : > { %2097 = vmatprep.mubr.f32.mxu1 %v2873_v51 }
 0x1f3   : > { %1630 = vmatmul.mubr.f32.vlgmr.msra.gmra.mrb[2].mxu0 %v3562_v39 }
 0x1f4   : > { %1639 = vmatpush1.msra.mxu0 %v1247_v28  ;;  %2099 = vmatmul.mubr.f32.vlgmr.msra.gmra.mrb[2].mxu1 %v3564_v2 }
 0x1f5   : > { %2108 = vmatpush1.msra.mxu1 %v1247_v28  ;;  %1702 = vmatprep.mubr.f32.mxu0 %v2873_v51 }
 0x1f6   : > { %2171 = vmatprep.mubr.f32.mxu1 %v2873_v51 }
 0x1fb   : > { %1704 = vmatmul.mubr.f32.vlgmr.msra.gmra.mrb[2].mxu0 %v3562_v39 }
 0x1fc   : > { %2173 = vmatmul.mubr.f32.vlgmr.msra.gmra.mrb[2].mxu1 %v3564_v2 }
 0x2ce   : > { %v1705_v25 = vpop.f32.mrb[2].mxu0 }
 0x2cf   : > { %v2174_v62 = vpop.f32.mrb[2].mxu1  ;;  %v1707_v27 = vpop.f32.mrb[3].mxu0 }
 0x2d0   : > { %v2179_v15 = vmax.f32 %v1705_v25, %v2174_v62  ;;  %v2176_v11 = vpop.f32.mrb[3].mxu1 }
 0x2d1   : > { %v2180_v17 = vmax.f32 %v1707_v27, %v2176_v11 }
 0x2d2   : > { %v2182_v16 = vadd.f32 %v2181_v36, %v2179_v15 }
 0x2d3   : > { %v2183_v20 = vadd.f32 %v2181_v36, %v2180_v17 }
 0x2d5   : > { %v2186_v40 = vcombine.low %v2182_v16, %v2183_v20 }
 0x2d7   : > { %v2193_v10 = vrot.slane %v2186_v40, %v2192_v49 }
 0x2d9   : > { %v2200_v6 = vrot.slane %v2193_v10, %v2192_v49 }
 0x2db   : > { %2206 = vst.msk [vmem:[%s232_s10] sm:$0x3] %vm2204_vm3, %v2200_v6 }
 0x2dc   : > { %2817 = shalt.err (!%p2814_p2)
}
 0x2dd   : > { %s2818_s11 = scalar_lea.hbm %s3594_s15, 32  ;;  %s2822_s6 = scalar_lea.hbm %s3641_s5, 64 }
 0x2de   : > { %p2819_p3 = scmp.ne.s32.totalorder %s3594_s15, %s2818_s11  ;;  %p2823_p8 = scmp.lt.u32.totalorder %s3594_s15, %s3641_s5 }
 0x2df   : > { %p2824_p11 = scmp.lt.u32.totalorder %s2822_s6, %s2818_s11  ;;  %p2826_p10 = scmp.lt.u32.totalorder %s2818_s11, %s3594_s15 }
 0x2e0   : > { %p2820_p4 = pnand %p2819_p3, %p2944_p5 }
 0x2e1   : > { %p2825_p9 = por %p2824_p11, %p2823_p8 }
 0x2e2   : > { %p2821_p7 = pneg %p2820_p4 }
 0x2e3   : > { %p2827_p12 = por %p2826_p10, %p2825_p9 }
 0x2e5   : > { %p2828_p13 = pnand %p2827_p12, %p2821_p7 }
 0x2e7   : > { %2831 = shalt.err (!%p2828_p13)
}
 0x2e8   : > { %2741 = dma.vmem_to_hbm [thread:$0]  (%p2944_p5), %s3596_s12, 32, %s3594_s15, %s2208_s16  }
 0x2e9 PF: > { %p2753_p0 = scmp.ge.s32.totalorder %s2870_s21, 2  ;;  %s2234_s9 = sand.u32 1, %s2858_s18  }
 0x2ea   : > { %s2235_s10 = scalar_lea.sflag [#allocation3], %s2234_s9 }
 0x2eb   : > { %p2748_p1 = pnand %p2753_p0, %p2948_p6 }
 0x2ed   : > { %2853 = dma.done.wait (!%p2748_p1), %s2235_s10, 32  }
 0x2ee   : > { %2855 = vsyncadd (!%p2748_p1), %s2235_s10, 4294967264  ;;  %p16_p2 = scmp.ge.s32.totalorder %s2931_s24, 4   ;;  %s3724_s18 = smov %s2862_s19 }
 0x2ef   : > { %s3725_s19 = smov %s2866_s20  ;;  %s3726_s20 = smov %s2942_s27 }
 0x2f0   : > { %s3727_s21 = smov %s2931_s24  ;;  %18 = sbr.rel (!%p16_p2) target bundleno = 4 (0x4), region = 80 }
 0x2f7   :  { %2240 = vsyncpa [#allocation3], 1 }
 0x2f8   :  { %2242 = vsyncpa [#allocation3 + $0x1], 1 }
 0x2f9   :  { %2243 = vsyncpa [#allocation4], 1 }
 0x2fa   :  { %2245 = vsyncpa [#allocation4 + $0x1], 1 }

</bundles_post_ra>
